<compile_context>
chip_gen: v7x
topology: tpu7x:2x2x1
jax: 0.10.0
libtpu: 0.0.40
codegen_flags: <defaults>
</compile_context>

<pallas_src>
import functools
import jax
import jax.numpy as jnp
from jax import lax
from jax.experimental import pallas as pl
from jax.experimental.pallas import tpu as pltpu

# ----- scaled-down config mirroring RNN_Model -----
# Original: batch=36, input 32*32*2=2048, hidden=512, out=19, win=15, 2 stacked tanh RNN layers.
BATCH = 4          # batch_size (becomes RNN "seq" axis: nn.RNN default batch_first=False)
CHAN = 2           # DVS polarity channels
SPATIAL = 8        # 8x8 instead of 32x32
T_TOTAL = 8        # raw time bins (last axis)
WIN = 6            # `win` slice (becomes RNN "batch" axis)
HIDDEN = 128       # cfg_fc[0]
NUM_OUT = 19       # cfg_fc[-1]
INPUT_SIZE = CHAN * SPATIAL * SPATIAL  # 128

LANE = 128
SUBLANE = 8


def _round_up(x, m):
    return ((x + m - 1) // m) * m


def rnn_stack_kernel(x_ref, wih0_ref, b0_ref, w0cat_ref, b1_ref, w1cat_ref, bro_ref,
                     out_ref, hn_ref, hc_ref, *, seq_len, n_rows, readout_row):
    """2-layer tanh RNN + fused readout, fully VMEM resident, statically unrolled.

    x_ref     : (seq_len*n_rows, I) zero-padded, flattened input (seq-major)
    wih0_ref  : (I, H)              layer-0 input weights (transposed)
    b0_ref    : (1, H)              bih0 + bhh0
    w0cat_ref : (H, 2H)             [whh0.T | wih1.T]            (256-wide MXU op / step)
    b1_ref    : (n_rows, H)         bih1 + bhh1, pre-broadcast
    w1cat_ref : (H, H + O_pad)      [whh1.T | wro.T zero-padded] (recurrence + readout fused)
    bro_ref   : (1, O_pad)          readout bias, lane-padded
    out_ref   : (seq_len, O_pad)    readout(r_out[:, -1, :])
    hn_ref / hc_ref : (n_rows, H)   final hidden state of layer 0 / layer 1
    """
    H = w0cat_ref.shape[0]

    # Load every weight / bias tile exactly once, outside the unrolled recurrence.
    w0cat = w0cat_ref[...]          # (H, 2H)
    w1cat = w1cat_ref[...]          # (H, H + O_pad)
    b1 = b1_ref[...]                # (n_rows, H)
    bro = bro_ref[...]              # (1, O_pad)

    # Hoisted layer-0 input projection: one big matmul, bias folded in once (off the
    # per-step serialized critical path).
    pre0_all = (jnp.dot(x_ref[...], wih0_ref[...], preferred_element_type=jnp.float32)
                + b0_ref[...])                                     # (seq_len*n_rows, H)

    h0 = jnp.zeros((n_rows, H), jnp.float32)
    h1 = jnp.zeros((n_rows, H), jnp.float32)
    rec0 = jnp.zeros((n_rows, H), jnp.float32)   # h0_{t-1} @ whh0.T
    rec1 = jnp.zeros((n_rows, H), jnp.float32)   # h1_{t-1} @ whh1.T

    for t in range(seq_len):                      # static unroll of the short recurrence
        h0 = jnp.tanh(pre0_all[t * n_rows:(t + 1) * n_rows, :] + rec0)
        m0 = jnp.dot(h0, w0cat, preferred_element_type=jnp.float32)   # (N, 2H)
        h1 = jnp.tanh(m0[:, H:] + rec1 + b1)
        m1 = jnp.dot(h1, w1cat, preferred_element_type=jnp.float32)   # (N, H+O_pad)
        rec0 = m0[:, :H]
        rec1 = m1[:, :H]
        # readout of the last "win" row (batch_first=False quirk); static, lane-dense store
        out_ref[t:t + 1, :] = m1[readout_row:readout_row + 1, H:] + bro

    hn_ref[...] = h0     # h_n: final hidden state, layer 0
    hc_ref[...] = h1     # h_c: final hidden state, layer 1


def rnn_model_forward(inp, h_state, params, win=WIN):
    """Mirrors RNN_Model.forward. `h_state` is accepted but unused (exactly as in the original)."""
    del h_state
    B = inp.shape[0]
    # input[:, :, :, :, :win].view(B, -1, win).permute([0, 2, 1]); nn.RNN is batch_first=False,
    # so the RNN consumes seq=B, "batch"=win.
    x = inp[:, :, :, :, :win].reshape(B, -1, win)
    x = jnp.transpose(x, (0, 2, 1)).astype(jnp.float32)     # (S=B, N=win, I)
    S, N, I = x.shape
    H = params["whh0"].shape[0]
    O = params["wro"].shape[0]

    n_pad = _round_up(max(N, SUBLANE), SUBLANE)   # pad win rows to a full sublane tile
    o_pad = _round_up(max(O, LANE), LANE)         # pad readout lanes to a full lane tile

    # Zero-padded rows are independent (row-wise recurrence) and sliced off below.
    x_pad = jnp.zeros((S, n_pad, I), jnp.float32).at[:, :N, :].set(x)
    x2d = x_pad.reshape(S * n_pad, I)

    wih0_t = params["wih0"].T                                                  # (I, H)
    b0 = (params["bih0"] + params["bhh0"]).reshape(1, H)
    w0cat = jnp.concatenate([params["whh0"].T, params["wih1"].T], axis=1)      # (H, 2H)
    b1 = jnp.broadcast_to((params["bih1"] + params["bhh1"]).reshape(1, H), (n_pad, H))
    wro_pad = jnp.zeros((H, o_pad), jnp.float32).at[:, :O].set(params["wro"].T)
    w1cat = jnp.concatenate([params["whh1"].T, wro_pad], axis=1)               # (H, H+o_pad)
    bro = jnp.zeros((1, o_pad), jnp.float32).at[:, :O].set(params["bro"].reshape(1, O))

    kernel = functools.partial(rnn_stack_kernel, seq_len=S, n_rows=n_pad, readout_row=N - 1)
    vmem = lambda: pl.BlockSpec(memory_space=pltpu.MemorySpace.VMEM)
    out, hn, hc = pl.pallas_call(
        kernel,
        out_shape=(jax.ShapeDtypeStruct((S, o_pad), jnp.float32),
                   jax.ShapeDtypeStruct((n_pad, H), jnp.float32),
                   jax.ShapeDtypeStruct((n_pad, H), jnp.float32)),
        in_specs=[vmem() for _ in range(7)],
        out_specs=(vmem(), vmem(), vmem()),
        compiler_params=pltpu.CompilerParams(vmem_limit_bytes=32 * 1024 * 1024),
    )(x2d, wih0_t, b0, w0cat, b1, w1cat, bro)
    return out[:, :O], (hn[:N], hc[:N])


def rnn_model_forward_ref(inp, params, win=WIN):
    """Pure-JAX reference of the same semantics (for verification)."""
    B = inp.shape[0]
    x = jnp.transpose(inp[:, :, :, :, :win].reshape(B, -1, win), (0, 2, 1)).astype(jnp.float32)
    S, N, I = x.shape
    H = params["whh0"].shape[0]

    def step(carry, xt):
        h0, h1 = carry
        h0n = jnp.tanh(xt @ params["wih0"].T + params["bih0"]
                       + h0 @ params["whh0"].T + params["bhh0"])
        h1n = jnp.tanh(h0n @ params["wih1"].T + params["bih1"]
                       + h1 @ params["whh1"].T + params["bhh1"])
        out_t = h1n[-1] @ params["wro"].T + params["bro"]
        return (h0n, h1n), out_t

    init = (jnp.zeros((N, H), jnp.float32), jnp.zeros((N, H), jnp.float32))
    (h0f, h1f), outs = lax.scan(step, init, x)
    return outs, (h0f, h1f)


def init_params(key):
    """Deterministic init matching the nn.RNN / nn.Linear uniform(-1/sqrt(H), 1/sqrt(H)) scheme."""
    k = jax.random.split(key, 10)
    s = 1.0 / float(jnp.sqrt(HIDDEN))
    u = lambda kk, shape: jax.random.uniform(kk, shape, jnp.float32, -s, s)
    return dict(
        wih0=u(k[0], (HIDDEN, INPUT_SIZE)),
        whh0=u(k[1], (HIDDEN, HIDDEN)),
        bih0=u(k[2], (HIDDEN,)),
        bhh0=u(k[3], (HIDDEN,)),
        wih1=u(k[4], (HIDDEN, HIDDEN)),
        whh1=u(k[5], (HIDDEN, HIDDEN)),
        bih1=u(k[6], (HIDDEN,)),
        bhh1=u(k[7], (HIDDEN,)),
        wro=u(k[8], (NUM_OUT, HIDDEN)),
        bro=u(k[9], (NUM_OUT,)),
    )


if __name__ == "__main__":
    key = jax.random.PRNGKey(0)
    k_in, k_par = jax.random.split(key)
    params = init_params(k_par)

    # input: (batch, channels, H, W, time) — PyTorch NCHW(T)
    inp = jax.random.uniform(k_in, (BATCH, CHAN, SPATIAL, SPATIAL, T_TOTAL), jnp.float32)
    # zeros_hidden_state() analogue (unused by forward, exactly as in the original)
    h_state = [jnp.zeros((HIDDEN, HIDDEN), jnp.float32) for _ in range(2)]

    out, (h_n, h_c) = rnn_model_forward(inp, h_state, params, win=WIN)
    jax.block_until_ready((out, h_n, h_c))

    out_ref, (hn_ref, hc_ref) = rnn_model_forward_ref(inp, params, win=WIN)
    ok = (jnp.allclose(out, out_ref, atol=2e-3, rtol=2e-3)
          and jnp.allclose(h_n, hn_ref, atol=2e-3, rtol=2e-3)
          and jnp.allclose(h_c, hc_ref, atol=2e-3, rtol=2e-3))
    assert bool(ok), "Pallas kernel does not match reference"
    assert out.shape == (BATCH, NUM_OUT)
    assert h_n.shape == (WIN, HIDDEN) and h_c.shape == (WIN, HIDDEN)
    print("KERNEL_OK")
</pallas_src>

<mosaic_0001>
module attributes {stable_mosaic.version = 11 : i64} {
  func.func @rnn_stack_kernel(%arg0: memref<32x128xf32, #tpu.memory_space<vmem>>, %arg1: memref<128x128xf32, #tpu.memory_space<vmem>>, %arg2: memref<1x128xf32, #tpu.memory_space<vmem>>, %arg3: memref<128x256xf32, #tpu.memory_space<vmem>>, %arg4: memref<8x128xf32, #tpu.memory_space<vmem>>, %arg5: memref<128x256xf32, #tpu.memory_space<vmem>>, %arg6: memref<1x128xf32, #tpu.memory_space<vmem>>, %arg7: memref<4x128xf32, #tpu.memory_space<vmem>>, %arg8: memref<8x128xf32, #tpu.memory_space<vmem>>, %arg9: memref<8x128xf32, #tpu.memory_space<vmem>>) attributes {dimension_semantics = [], scalar_prefetch = 0 : i64, scratch_operands = 0 : i64, tpu.core_type = #tpu.core_type<tc>} {
    %c0 = arith.constant 0 : index
    %c0_0 = arith.constant 0 : index
    %0 = vector.load %arg3[%c0, %c0_0] : memref<128x256xf32, #tpu.memory_space<vmem>>, vector<128x256xf32>
    %c0_1 = arith.constant 0 : index
    %c0_2 = arith.constant 0 : index
    %1 = vector.load %arg5[%c0_1, %c0_2] : memref<128x256xf32, #tpu.memory_space<vmem>>, vector<128x256xf32>
    %c0_3 = arith.constant 0 : index
    %c0_4 = arith.constant 0 : index
    %2 = vector.load %arg4[%c0_3, %c0_4] : memref<8x128xf32, #tpu.memory_space<vmem>>, vector<8x128xf32>
    %c0_5 = arith.constant 0 : index
    %c0_6 = arith.constant 0 : index
    %3 = vector.load %arg6[%c0_5, %c0_6] : memref<1x128xf32, #tpu.memory_space<vmem>>, vector<1x128xf32>
    %c0_7 = arith.constant 0 : index
    %c0_8 = arith.constant 0 : index
    %4 = vector.load %arg0[%c0_7, %c0_8] : memref<32x128xf32, #tpu.memory_space<vmem>>, vector<32x128xf32>
    %c0_9 = arith.constant 0 : index
    %c0_10 = arith.constant 0 : index
    %5 = vector.load %arg1[%c0_9, %c0_10] : memref<128x128xf32, #tpu.memory_space<vmem>>, vector<128x128xf32>
    %cst = arith.constant dense<0.000000e+00> : vector<32x128xf32>
    %6 = tpu.matmul %4, %5, %cst {dimension_numbers = #tpu.dot_dimension_numbers<[1], [0], [0], [1], [0, 0, 1, 1], [], []>} : vector<32x128xf32>, vector<128x128xf32>, vector<32x128xf32> -> vector<32x128xf32>
    %c0_11 = arith.constant 0 : index
    %c0_12 = arith.constant 0 : index
    %7 = vector.load %arg2[%c0_11, %c0_12] : memref<1x128xf32, #tpu.memory_space<vmem>>, vector<1x128xf32>
    %8 = vector.broadcast %7 : vector<1x128xf32> to vector<32x128xf32>
    %9 = arith.addf %6, %8 : vector<32x128xf32>
    %cst_13 = arith.constant 0.000000e+00 : f32
    %10 = vector.broadcast %cst_13 : f32 to vector<8x128xf32>
    %cst_14 = arith.constant 0.000000e+00 : f32
    %11 = vector.broadcast %cst_14 : f32 to vector<8x128xf32>
    %12 = vector.extract_strided_slice %9 {offsets = [0, 0], sizes = [8, 128], strides = [1, 1]} : vector<32x128xf32> to vector<8x128xf32>
    %13 = arith.addf %12, %10 : vector<8x128xf32>
    %14 = math.tanh %13 : vector<8x128xf32>
    %cst_15 = arith.constant dense<0.000000e+00> : vector<8x256xf32>
    %15 = tpu.matmul %14, %0, %cst_15 {dimension_numbers = #tpu.dot_dimension_numbers<[1], [0], [0], [1], [0, 0, 1, 1], [], []>} : vector<8x128xf32>, vector<128x256xf32>, vector<8x256xf32> -> vector<8x256xf32>
    %16 = vector.extract_strided_slice %15 {offsets = [0, 128], sizes = [8, 128], strides = [1, 1]} : vector<8x256xf32> to vector<8x128xf32>
    %17 = arith.addf %16, %11 : vector<8x128xf32>
    %18 = arith.addf %17, %2 : vector<8x128xf32>
    %19 = math.tanh %18 : vector<8x128xf32>
    %cst_16 = arith.constant dense<0.000000e+00> : vector<8x256xf32>
    %20 = tpu.matmul %19, %1, %cst_16 {dimension_numbers = #tpu.dot_dimension_numbers<[1], [0], [0], [1], [0, 0, 1, 1], [], []>} : vector<8x128xf32>, vector<128x256xf32>, vector<8x256xf32> -> vector<8x256xf32>
    %21 = vector.extract_strided_slice %15 {offsets = [0, 0], sizes = [8, 128], strides = [1, 1]} : vector<8x256xf32> to vector<8x128xf32>
    %22 = vector.extract_strided_slice %20 {offsets = [0, 0], sizes = [8, 128], strides = [1, 1]} : vector<8x256xf32> to vector<8x128xf32>
    %23 = vector.extract_strided_slice %20 {offsets = [5, 128], sizes = [1, 128], strides = [1, 1]} : vector<8x256xf32> to vector<1x128xf32>
    %24 = arith.addf %23, %3 : vector<1x128xf32>
    %c0_17 = arith.constant 0 : index
    %c0_18 = arith.constant 0 : index
    %25 = vector.load %arg7[%c0_17, %c0_18] : memref<4x128xf32, #tpu.memory_space<vmem>>, vector<1x128xf32>
    tpu.vector_store %arg7[%c0_17, %c0_18], %24 {strides = array<i32>} : memref<4x128xf32, #tpu.memory_space<vmem>>, vector<1x128xf32>,
    %26 = vector.extract_strided_slice %9 {offsets = [8, 0], sizes = [8, 128], strides = [1, 1]} : vector<32x128xf32> to vector<8x128xf32>
    %27 = arith.addf %26, %21 : vector<8x128xf32>
    %28 = math.tanh %27 : vector<8x128xf32>
    %cst_19 = arith.constant dense<0.000000e+00> : vector<8x256xf32>
    %29 = tpu.matmul %28, %0, %cst_19 {dimension_numbers = #tpu.dot_dimension_numbers<[1], [0], [0], [1], [0, 0, 1, 1], [], []>} : vector<8x128xf32>, vector<128x256xf32>, vector<8x256xf32> -> vector<8x256xf32>
    %30 = vector.extract_strided_slice %29 {offsets = [0, 128], sizes = [8, 128], strides = [1, 1]} : vector<8x256xf32> to vector<8x128xf32>
    %31 = arith.addf %30, %22 : vector<8x128xf32>
    %32 = arith.addf %31, %2 : vector<8x128xf32>
    %33 = math.tanh %32 : vector<8x128xf32>
    %cst_20 = arith.constant dense<0.000000e+00> : vector<8x256xf32>
    %34 = tpu.matmul %33, %1, %cst_20 {dimension_numbers = #tpu.dot_dimension_numbers<[1], [0], [0], [1], [0, 0, 1, 1], [], []>} : vector<8x128xf32>, vector<128x256xf32>, vector<8x256xf32> -> vector<8x256xf32>
    %35 = vector.extract_strided_slice %29 {offsets = [0, 0], sizes = [8, 128], strides = [1, 1]} : vector<8x256xf32> to vector<8x128xf32>
    %36 = vector.extract_strided_slice %34 {offsets = [0, 0], sizes = [8, 128], strides = [1, 1]} : vector<8x256xf32> to vector<8x128xf32>
    %37 = vector.extract_strided_slice %34 {offsets = [5, 128], sizes = [1, 128], strides = [1, 1]} : vector<8x256xf32> to vector<1x128xf32>
    %38 = arith.addf %37, %3 : vector<1x128xf32>
    %c1 = arith.constant 1 : index
    %c0_21 = arith.constant 0 : index
    %39 = vector.load %arg7[%c1, %c0_21] : memref<4x128xf32, #tpu.memory_space<vmem>>, vector<1x128xf32>
    tpu.vector_store %arg7[%c1, %c0_21], %38 {strides = array<i32>} : memref<4x128xf32, #tpu.memory_space<vmem>>, vector<1x128xf32>,
    %40 = vector.extract_strided_slice %9 {offsets = [16, 0], sizes = [8, 128], strides = [1, 1]} : vector<32x128xf32> to vector<8x128xf32>
    %41 = arith.addf %40, %35 : vector<8x128xf32>
    %42 = math.tanh %41 : vector<8x128xf32>
    %cst_22 = arith.constant dense<0.000000e+00> : vector<8x256xf32>
    %43 = tpu.matmul %42, %0, %cst_22 {dimension_numbers = #tpu.dot_dimension_numbers<[1], [0], [0], [1], [0, 0, 1, 1], [], []>} : vector<8x128xf32>, vector<128x256xf32>, vector<8x256xf32> -> vector<8x256xf32>
    %44 = vector.extract_strided_slice %43 {offsets = [0, 128], sizes = [8, 128], strides = [1, 1]} : vector<8x256xf32> to vector<8x128xf32>
    %45 = arith.addf %44, %36 : vector<8x128xf32>
    %46 = arith.addf %45, %2 : vector<8x128xf32>
    %47 = math.tanh %46 : vector<8x128xf32>
    %cst_23 = arith.constant dense<0.000000e+00> : vector<8x256xf32>
    %48 = tpu.matmul %47, %1, %cst_23 {dimension_numbers = #tpu.dot_dimension_numbers<[1], [0], [0], [1], [0, 0, 1, 1], [], []>} : vector<8x128xf32>, vector<128x256xf32>, vector<8x256xf32> -> vector<8x256xf32>
    %49 = vector.extract_strided_slice %43 {offsets = [0, 0], sizes = [8, 128], strides = [1, 1]} : vector<8x256xf32> to vector<8x128xf32>
    %50 = vector.extract_strided_slice %48 {offsets = [0, 0], sizes = [8, 128], strides = [1, 1]} : vector<8x256xf32> to vector<8x128xf32>
    %51 = vector.extract_strided_slice %48 {offsets = [5, 128], sizes = [1, 128], strides = [1, 1]} : vector<8x256xf32> to vector<1x128xf32>
    %52 = arith.addf %51, %3 : vector<1x128xf32>
    %c2 = arith.constant 2 : index
    %c0_24 = arith.constant 0 : index
    %53 = vector.load %arg7[%c2, %c0_24] : memref<4x128xf32, #tpu.memory_space<vmem>>, vector<1x128xf32>
    tpu.vector_store %arg7[%c2, %c0_24], %52 {strides = array<i32>} : memref<4x128xf32, #tpu.memory_space<vmem>>, vector<1x128xf32>,
    %54 = vector.extract_strided_slice %9 {offsets = [24, 0], sizes = [8, 128], strides = [1, 1]} : vector<32x128xf32> to vector<8x128xf32>
    %55 = arith.addf %54, %49 : vector<8x128xf32>
    %56 = math.tanh %55 : vector<8x128xf32>
    %cst_25 = arith.constant dense<0.000000e+00> : vector<8x256xf32>
    %57 = tpu.matmul %56, %0, %cst_25 {dimension_numbers = #tpu.dot_dimension_numbers<[1], [0], [0], [1], [0, 0, 1, 1], [], []>} : vector<8x128xf32>, vector<128x256xf32>, vector<8x256xf32> -> vector<8x256xf32>
    %58 = vector.extract_strided_slice %57 {offsets = [0, 128], sizes = [8, 128], strides = [1, 1]} : vector<8x256xf32> to vector<8x128xf32>
    %59 = arith.addf %58, %50 : vector<8x128xf32>
    %60 = arith.addf %59, %2 : vector<8x128xf32>
    %61 = math.tanh %60 : vector<8x128xf32>
    %cst_26 = arith.constant dense<0.000000e+00> : vector<8x256xf32>
    %62 = tpu.matmul %61, %1, %cst_26 {dimension_numbers = #tpu.dot_dimension_numbers<[1], [0], [0], [1], [0, 0, 1, 1], [], []>} : vector<8x128xf32>, vector<128x256xf32>, vector<8x256xf32> -> vector<8x256xf32>
    %63 = vector.extract_strided_slice %62 {offsets = [5, 128], sizes = [1, 128], strides = [1, 1]} : vector<8x256xf32> to vector<1x128xf32>
    %64 = arith.addf %63, %3 : vector<1x128xf32>
    %c3 = arith.constant 3 : index
    %c0_27 = arith.constant 0 : index
    %65 = vector.load %arg7[%c3, %c0_27] : memref<4x128xf32, #tpu.memory_space<vmem>>, vector<1x128xf32>
    tpu.vector_store %arg7[%c3, %c0_27], %64 {strides = array<i32>} : memref<4x128xf32, #tpu.memory_space<vmem>>, vector<1x128xf32>,
    %c0_28 = arith.constant 0 : index
    %c0_29 = arith.constant 0 : index
    %66 = vector.load %arg8[%c0_28, %c0_29] : memref<8x128xf32, #tpu.memory_space<vmem>>, vector<8x128xf32>
    tpu.vector_store %arg8[%c0_28, %c0_29], %56 {strides = array<i32>} : memref<8x128xf32, #tpu.memory_space<vmem>>, vector<8x128xf32>,
    %c0_30 = arith.constant 0 : index
    %c0_31 = arith.constant 0 : index
    %67 = vector.load %arg9[%c0_30, %c0_31] : memref<8x128xf32, #tpu.memory_space<vmem>>, vector<8x128xf32>
    tpu.vector_store %arg9[%c0_30, %c0_31], %61 {strides = array<i32>} : memref<8x128xf32, #tpu.memory_space<vmem>>, vector<8x128xf32>,
    return
  }
}

</mosaic_0001>

<bundles_post_ra>
// kernel: tpu_custom_call.1
= control target key start
LH: loop header
LB: loop body
LE: loop exit
PB: predicated region body
PF: predicated region fallthrough
CT: control target
= control target key end

     0   :  { %15 = vsyncpa [#allocation3], 0  ;;  %s1830_s0 = inlined_call_operand.hbm [shape: f32[32,128], index: 0, kind: input, shape index: {}]   ;;  %s1831_s1 = inlined_call_operand.hbm [shape: f32[128,128], index: 1, kind: input, shape index: {}]   ;;  %s1832_s2 = inlined_call_operand.vmem [shape: f32[1,128], index: 2, kind: input, shape index: {}]   ;;  %s1833_s3 = inlined_call_operand.hbm [shape: f32[128,256], index: 3, kind: input, shape index: {}]   ;;  %s1834_s4 = inlined_call_operand.vmem [shape: f32[8,128], index: 4, kind: input, shape index: {}]   ;;  %s1835_s5 = inlined_call_operand.hbm [shape: f32[128,256], index: 5, kind: input, shape index: {}]   ;;  %s1836_s6 = inlined_call_operand.vmem [shape: f32[1,128], index: 6, kind: input, shape index: {}]   ;;  %s1837_s7 = inlined_call_operand.hbm [shape: f32[4,128], index: 7, kind: output, shape index: {0}]   ;;  %s1838_s8 = inlined_call_operand.hbm [shape: f32[8,128], index: 8, kind: output, shape index: {1}]   ;;  %s1839_s9 = inlined_call_operand.hbm [shape: f32[8,128], index: 9, kind: output, shape index: {2}]  }
   0x1   :  { %16 = vsyncpa [#allocation6], 0 }
   0x2   :  { %17 = vsyncpa [#allocation9], 0 }
   0x3   :  { %18 = vsyncpa [#allocation4], 0 }
   0x4   :  { %19 = vsyncpa [#allocation12], 0  ;;  %s1450_s30 = smov [#allocation5]   ;;  %s1451_s11 = smov [#allocation2]  }
   0x5   :  { %s37_s10 = sshll.u32 %s1450_s30, 4  ;;  %s25_s12 = sshll.u32 %s1451_s11, 4  ;;  %s38_s10 = int_to_ptr.vmem [resolvable:$true] %s37_s10  ;;  %s1512_s12 = int_to_ptr.vmem [resolvable:$true] %s25_s12 }
   0x6   :  { %s1286_s15 = scalar_lea.hbm %s1831_s1, 2048 }
   0x7   :  { %p1287_p0 = scmp.ne.s32.totalorder %s1831_s1, %s1286_s15  ;;  %p1290_p1 = scmp.lt.u32.totalorder %s1286_s15, %s1831_s1 }
   0x9   :  { %p1292_p2 = pnand %p1290_p1, %p1287_p0 }
   0xb   :  { %1295 = shalt.err (!%p1292_p2)
}
   0xc   :  { %s1296_s20 = scalar_lea.vmem %s38_s10, 2048  ;;  %p1301_p4 = scmp.lt.s32.totalorder %s38_s10, %s38_s10 }
   0xd   :  { %p1297_p3 = scmp.ne.s32.totalorder %s38_s10, %s1296_s20  ;;  %p1302_p5 = scmp.lt.s32.totalorder %s1296_s20, %s1296_s20 }
   0xf   :  { %p1303_p6 = por %p1302_p5, %p1301_p4 }
  0x11   :  { %p1304_p7 = pnand %p1303_p6, %p1297_p3 }
  0x13   :  { %1307 = shalt.err (!%p1304_p7)
}
  0x14   :  { %s1452_s21 = smov 128   ;;  %s1453_s22 = smov 8  }
  0x15   :  { %43 = dma.hbm_to_vmem [thread:$0]  %s1831_s1, 2048, %s38_s10, [#allocation6], %s1452_s21, %s1452_s21, %s1453_s22  }
  0x16   :  { %s1308_s27 = scalar_lea.hbm %s1830_s0, 512 }
  0x17   :  { %p1309_p8 = scmp.ne.s32.totalorder %s1830_s0, %s1308_s27  ;;  %p1312_p9 = scmp.lt.u32.totalorder %s1308_s27, %s1830_s0 }
  0x19   :  { %p1314_p10 = pnand %p1312_p9, %p1309_p8 }
  0x1b   :  { %1317 = shalt.err (!%p1314_p10)
}
  0x1c   :  { %s1318_s13 = scalar_lea.vmem %s1512_s12, 512  ;;  %p1323_p12 = scmp.lt.s32.totalorder %s1512_s12, %s1512_s12 }
  0x1d   :  { %p1319_p11 = scmp.ne.s32.totalorder %s1512_s12, %s1318_s13  ;;  %p1324_p13 = scmp.lt.s32.totalorder %s1318_s13, %s1318_s13 }
  0x1f   :  { %p1325_p0 = por %p1324_p13, %p1323_p12 }
  0x21   :  { %p1326_p1 = pnand %p1325_p0, %p1319_p11 }
  0x23   :  { %1329 = shalt.err (!%p1326_p1)
}
  0x24   :  { %31 = dma.hbm_to_vmem [thread:$0]  %s1830_s0, 512, %s1512_s12, [#allocation3], %s1452_s21, %s1452_s21, %s1453_s22  }
  0x25   :  { %s1454_s14 = smov [#allocation7]   ;;  %s1330_s18 = scalar_lea.hbm %s1833_s3, 4096 }
  0x26   :  { %s51_s15 = sshll.u32 %s1454_s14, 4  ;;  %p1331_p2 = scmp.ne.s32.totalorder %s1833_s3, %s1330_s18  ;;  %s52_s15 = int_to_ptr.vmem [resolvable:$true] %s51_s15 }
  0x27   :  { %p1334_p3 = scmp.lt.u32.totalorder %s1330_s18, %s1833_s3 }
  0x29   :  { %p1336_p4 = pnand %p1334_p3, %p1331_p2 }
  0x2b   :  { %1339 = shalt.err (!%p1336_p4)
}
  0x2c   :  { %s1340_s25 = scalar_lea.vmem %s52_s15, 4096  ;;  %p1345_p6 = scmp.lt.s32.totalorder %s52_s15, %s52_s15 }
  0x2d   :  { %p1341_p5 = scmp.ne.s32.totalorder %s52_s15, %s1340_s25  ;;  %p1346_p7 = scmp.lt.s32.totalorder %s1340_s25, %s1340_s25 }
  0x2f   :  { %p1347_p8 = por %p1346_p7, %p1345_p6 }
  0x31   :  { %p1348_p9 = pnand %p1347_p8, %p1341_p5 }
  0x33   :  { %1351 = shalt.err (!%p1348_p9)
}
  0x34   :  { %s1455_s0 = smov 256   ;;  %s1456_s12 = smov 16  }
  0x35   :  { %57 = dma.hbm_to_vmem [thread:$0]  %s1833_s3, 4096, %s52_s15, [#allocation6], %s1455_s0, %s1455_s0, %s1456_s12  }
  0x36   :  { %s1457_s26 = smov [#allocation8]   ;;  %s1352_s30 = scalar_lea.hbm %s1835_s5, 4096 }
  0x37   :  { %s65_s27 = sshll.u32 %s1457_s26, 4  ;;  %p1353_p10 = scmp.ne.s32.totalorder %s1835_s5, %s1352_s30  ;;  %s66_s27 = int_to_ptr.vmem [resolvable:$true] %s65_s27 }
  0x38   :  { %p1356_p11 = scmp.lt.u32.totalorder %s1352_s30, %s1835_s5 }
  0x3a   :  { %p1358_p12 = pnand %p1356_p11, %p1353_p10 }
  0x3c   :  { %1361 = shalt.err (!%p1358_p12)
}
  0x3d   :  { %s1362_s14 = scalar_lea.vmem %s66_s27, 4096  ;;  %p1367_p0 = scmp.lt.s32.totalorder %s66_s27, %s66_s27 }
  0x3e   :  { %p1363_p13 = scmp.ne.s32.totalorder %s66_s27, %s1362_s14  ;;  %p1368_p1 = scmp.lt.s32.totalorder %s1362_s14, %s1362_s14 }
  0x40   :  { %p1369_p2 = por %p1368_p1, %p1367_p0 }
  0x42   :  { %p1370_p3 = pnand %p1369_p2, %p1363_p13 }
  0x44   :  { %1373 = shalt.err (!%p1370_p3)
}
  0x45   :  { %71 = dma.hbm_to_vmem [thread:$0]  %s1835_s5, 4096, %s66_s27, [#allocation9], %s1455_s0, %s1455_s0, %s1456_s12  }
  0x46   :  { %1440 = dma.done.wait [#allocation3], 512  }
  0x47   :  { %1441 = vsyncadd [#allocation3], 4294966784 }
  0x48   :  { %1442 = dma.done.wait [#allocation6], 6144  }
  0x49   :  { %1443 = vsyncadd [#allocation6], 4294961152 }
  0x4a   :  { %1444 = dma.done.wait [#allocation9], 4096  }
  0x4b   :  { %1445 = vsyncadd [#allocation9], 4294963200  ;;  %v156_v0 = vld [vmem:[#allocation5] sm:$0xff]  ;;  %v157_v1 = vld [vmem:[#allocation5 + $0x8] sm:$0xff] }
  0x4c   :  { %v158_v2 = vld [vmem:[#allocation5 + $0x10] sm:$0xff]  ;;  %v970_v3 = vpack.c.bf16 %v157_v1, %v156_v0  ;;  %v159_v4 = vld [vmem:[#allocation5 + $0x18] sm:$0xff]  ;;  %v160_v6 = vld [vmem:[#allocation5 + $0x20] sm:$0xff] }
  0x4d   :  { %v974_v5 = vpack.c.bf16 %v159_v4, %v158_v2  ;;  %v161_v7 = vld [vmem:[#allocation5 + $0x28] sm:$0xff]  ;;  %v162_v9 = vld [vmem:[#allocation5 + $0x30] sm:$0xff]  ;;  %v163_v10 = vld [vmem:[#allocation5 + $0x38] sm:$0xff] }
  0x4e   :  { %971 = vmatprep.subr.bf16.mxu0 %v970_v3  ;;  %v978_v8 = vpack.c.bf16 %v161_v7, %v160_v6  ;;  %v152_v11 = vld [vmem:[#allocation2] sm:$0xff]  ;;  %v87_v12 = vld [vmem:[#allocation7 + $0x8] sm:$0xff]  ;;  %v89_v13 = vld [vmem:[#allocation7 + $0x18] sm:$0xff]  ;;  %v982_v24 = vpack.c.bf16 %v163_v10, %v162_v9 }
  0x4f   :  { %973 = vmatpush3.bf16.msra.mxu0 %v970_v3  ;;  %964 = vmatprep.mubr.f32.mxu0 %v152_v11  ;;  %v86_v14 = vld [vmem:[#allocation7] sm:$0xff]  ;;  %v1567_v15 = vpack.c.bf16 %v89_v13, %v87_v12  ;;  %v88_v16 = vld [vmem:[#allocation7 + $0x10] sm:$0xff]  ;;  %v91_v17 = vld [vmem:[#allocation7 + $0x28] sm:$0xff] }
  0x50   :  { %975 = vmatprep.subr.bf16.mxu0 %v974_v5  ;;  %v93_v18 = vld [vmem:[#allocation7 + $0x38] sm:$0xff]  ;;  %v1569_v19 = vpack.c.bf16 %v88_v16, %v86_v14  ;;  %v90_v21 = vld [vmem:[#allocation7 + $0x20] sm:$0xff]  ;;  %v92_v22 = vld [vmem:[#allocation7 + $0x30] sm:$0xff] }
  0x51   :  { %v1571_v20 = vpack.c.bf16 %v93_v18, %v91_v17  ;;  %v95_v23 = vld [vmem:[#allocation7 + $0x48] sm:$0xff]  ;;  %1003 = vmatprep.subr.bf16.mxu1 %v1567_v15  ;;  %v97_v25 = vld [vmem:[#allocation7 + $0x58] sm:$0xff]  ;;  %v164_v26 = vld [vmem:[#allocation5 + $0x40] sm:$0xff]  ;;  %v1575_v28 = vpack.c.bf16 %v92_v22, %v90_v21 }
  0x52   :  { %v165_v27 = vld [vmem:[#allocation5 + $0x48] sm:$0xff]  ;;  %1005 = vmatpush1.bf16.msra.mxu1 %v1569_v19  ;;  %v1578_v29 = vpack.c.bf16 %v97_v25, %v95_v23  ;;  %v94_v30 = vld [vmem:[#allocation7 + $0x40] sm:$0xff]  ;;  %v96_v31 = vld [vmem:[#allocation7 + $0x50] sm:$0xff] }
  0x53   :  { %977 = vmatpush3.bf16.msra.mxu0 %v974_v5  ;;  %1007 = vmatprep.subr.bf16.mxu1 %v1571_v20  ;;  %v99_v32 = vld [vmem:[#allocation7 + $0x68] sm:$0xff]  ;;  %v101_v33 = vld [vmem:[#allocation7 + $0x78] sm:$0xff]  ;;  %v986_v34 = vpack.c.bf16 %v165_v27, %v164_v26  ;;  %v166_v35 = vld [vmem:[#allocation5 + $0x50] sm:$0xff]  ;;  %v1581_v37 = vpack.c.bf16 %v96_v31, %v94_v30  ;;  %v1458_v5 = vmov 0.0  }
  0x54   :  { %979 = vmatprep.subr.bf16.mxu0 %v978_v8  ;;  %v167_v36 = vld [vmem:[#allocation5 + $0x58] sm:$0xff]  ;;  %v1584_v38 = vpack.c.bf16 %v101_v33, %v99_v32  ;;  %v98_v39 = vld [vmem:[#allocation7 + $0x60] sm:$0xff]  ;;  %v100_v40 = vld [vmem:[#allocation7 + $0x70] sm:$0xff]  ;;  %330 = vmatprep.mubr.f32.mxu1 %v1458_v5 }
  0x55   :  { %v103_v41 = vld [vmem:[#allocation7 + $0x88] sm:$0xff]  ;;  %v105_v42 = vld [vmem:[#allocation7 + $0x98] sm:$0xff]  ;;  %v990_v43 = vpack.c.bf16 %v167_v36, %v166_v35  ;;  %v168_v44 = vld [vmem:[#allocation5 + $0x60] sm:$0xff]  ;;  %v1587_v46 = vpack.c.bf16 %v100_v40, %v98_v39 }
  0x56   :  { %1009 = vmatpush1.bf16.msra.mxu1 %v1575_v28  ;;  %v169_v45 = vld [vmem:[#allocation5 + $0x68] sm:$0xff]  ;;  %v1590_v47 = vpack.c.bf16 %v105_v42, %v103_v41  ;;  %v170_v49 = vld [vmem:[#allocation5 + $0x70] sm:$0xff]  ;;  %v171_v50 = vld [vmem:[#allocation5 + $0x78] sm:$0xff] }
  0x57   :  { %981 = vmatpush3.bf16.msra.mxu0 %v978_v8  ;;  %1011 = vmatprep.subr.bf16.mxu1 %v1578_v29  ;;  %v994_v48 = vpack.c.bf16 %v169_v45, %v168_v44  ;;  %v998_v51 = vpack.c.bf16 %v171_v50, %v170_v49  ;;  %v153_v52 = vld [vmem:[#allocation2 + $0x8] sm:$0xff]  ;;  %v102_v53 = vld [vmem:[#allocation7 + $0x80] sm:$0xff]  ;;  %v104_v54 = vld [vmem:[#allocation7 + $0x90] sm:$0xff] }
  0x58   :  { %983 = vmatprep.subr.bf16.mxu0 %v982_v24  ;;  %v1594_v55 = vpack.c.bf16 %v104_v54, %v102_v53  ;;  %v107_v56 = vld [vmem:[#allocation7 + $0xa8] sm:$0xff]  ;;  %v109_v57 = vld [vmem:[#allocation7 + $0xb8] sm:$0xff]  ;;  %v106_v59 = vld [vmem:[#allocation7 + $0xa0] sm:$0xff] }
  0x59   :  { %v1597_v58 = vpack.c.bf16 %v109_v57, %v107_v56  ;;  %v108_v60 = vld [vmem:[#allocation7 + $0xb0] sm:$0xff]  ;;  %v111_v62 = vld [vmem:[#allocation7 + $0xc8] sm:$0xff]  ;;  %v113_v63 = vld [vmem:[#allocation7 + $0xd8] sm:$0xff] }
  0x5a   :  { %1013 = vmatpush1.bf16.msra.mxu1 %v1581_v37  ;;  %v1599_v61 = vpack.c.bf16 %v108_v60, %v106_v59  ;;  %v110_v0 = vld [vmem:[#allocation7 + $0xc0] sm:$0xff]  ;;  %v1603_v1 = vpack.c.bf16 %v113_v63, %v111_v62  ;;  %v112_v2 = vld [vmem:[#allocation7 + $0xd0] sm:$0xff]  ;;  %v115_v3 = vld [vmem:[#allocation7 + $0xe8] sm:$0xff] }
  0x5b   :  { %985 = vmatpush3.bf16.msra.mxu0 %v982_v24  ;;  %1015 = vmatprep.subr.bf16.mxu1 %v1584_v38  ;;  %v117_v4 = vld [vmem:[#allocation7 + $0xf8] sm:$0xff]  ;;  %v1606_v6 = vpack.c.bf16 %v112_v2, %v110_v0  ;;  %v114_v8 = vld [vmem:[#allocation7 + $0xe0] sm:$0xff]  ;;  %v116_v9 = vld [vmem:[#allocation7 + $0xf0] sm:$0xff] }
  0x5c   :  { %987 = vmatprep.subr.bf16.mxu0 %v986_v34  ;;  %v1608_v7 = vpack.c.bf16 %v117_v4, %v115_v3  ;;  %v1612_v10 = vpack.c.bf16 %v116_v9, %v114_v8  ;;  %v119_v11 = vld [vmem:[#allocation8 + $0x8] sm:$0xff]  ;;  %v121_v12 = vld [vmem:[#allocation8 + $0x18] sm:$0xff]  ;;  %v118_v14 = vld [vmem:[#allocation8] sm:$0xff] }
  0x5d   :  { %v1617_v13 = vpack.c.bf16 %v121_v12, %v119_v11  ;;  %v120_v16 = vld [vmem:[#allocation8 + $0x10] sm:$0xff]  ;;  %v123_v18 = vld [vmem:[#allocation8 + $0x28] sm:$0xff]  ;;  %v125_v21 = vld [vmem:[#allocation8 + $0x38] sm:$0xff] }
  0x5e   :  { %1017 = vmatpush1.bf16.msra.mxu1 %v1587_v46  ;;  %v1619_v17 = vpack.c.bf16 %v120_v16, %v118_v14  ;;  %v1622_v22 = vpack.c.bf16 %v125_v21, %v123_v18  ;;  %v122_v23 = vld [vmem:[#allocation8 + $0x20] sm:$0xff]  ;;  %v124_v24 = vld [vmem:[#allocation8 + $0x30] sm:$0xff]  ;;  %v127_v26 = vld [vmem:[#allocation8 + $0x48] sm:$0xff] }
  0x5f   :  { %989 = vmatpush3.bf16.msra.mxu0 %v986_v34  ;;  %1019 = vmatprep.subr.bf16.mxu1 %v1590_v47  ;;  %v1626_v25 = vpack.c.bf16 %v124_v24, %v122_v23  ;;  %v129_v27 = vld [vmem:[#allocation8 + $0x58] sm:$0xff]  ;;  %v126_v31 = vld [vmem:[#allocation8 + $0x40] sm:$0xff]  ;;  %v128_v32 = vld [vmem:[#allocation8 + $0x50] sm:$0xff] }
  0x60   :  { %991 = vmatprep.subr.bf16.mxu0 %v990_v43  ;;  %v1628_v30 = vpack.c.bf16 %v129_v27, %v127_v26  ;;  %v1632_v33 = vpack.c.bf16 %v128_v32, %v126_v31  ;;  %v131_v34 = vld [vmem:[#allocation8 + $0x68] sm:$0xff]  ;;  %v133_v35 = vld [vmem:[#allocation8 + $0x78] sm:$0xff]  ;;  %v130_v39 = vld [vmem:[#allocation8 + $0x60] sm:$0xff] }
  0x61   :  { %v1634_v36 = vpack.c.bf16 %v133_v35, %v131_v34  ;;  %v132_v40 = vld [vmem:[#allocation8 + $0x70] sm:$0xff]  ;;  %v135_v42 = vld [vmem:[#allocation8 + $0x88] sm:$0xff]  ;;  %v1647_v45 = vld [vmem:[%s1832_s2] ss:$0 sm:$0xff] }
  0x62   :  { %1021 = vmatpush1.bf16.msra.mxu1 %v1594_v55  ;;  %v1638_v41 = vpack.c.bf16 %v132_v40, %v130_v39  ;;  %v136_v53 = vld [vmem:[#allocation8 + $0x90] sm:$0xff]  ;;  %v139_v56 = vld [vmem:[#allocation8 + $0xa8] sm:$0xff]  ;;  %v141_v57 = vld [vmem:[#allocation8 + $0xb8] sm:$0xff] }
  0x63   :  { %993 = vmatpush3.bf16.msra.mxu0 %v990_v43  ;;  %1023 = vmatprep.subr.bf16.mxu1 %v1597_v58  ;;  %v137_v43 = vld [vmem:[#allocation8 + $0x98] sm:$0xff]  ;;  %v1670_v59 = vpack.c.bf16 %v141_v57, %v139_v56  ;;  %v138_v60 = vld [vmem:[#allocation8 + $0xa0] sm:$0xff]  ;;  %v140_v62 = vld [vmem:[#allocation8 + $0xb0] sm:$0xff] }
  0x64   :  { %995 = vmatprep.subr.bf16.mxu0 %v994_v48  ;;  %v1640_v44 = vpack.c.bf16 %v137_v43, %v135_v42  ;;  %v1672_v63 = vpack.c.bf16 %v140_v62, %v138_v60  ;;  %v143_v0 = vld [vmem:[#allocation8 + $0xc8] sm:$0xff]  ;;  %v145_v2 = vld [vmem:[#allocation8 + $0xd8] sm:$0xff]  ;;  %v142_v3 = vld [vmem:[#allocation8 + $0xc0] sm:$0xff] }
  0x65   :  { %v1676_v4 = vpack.c.bf16 %v145_v2, %v143_v0  ;;  %v144_v8 = vld [vmem:[#allocation8 + $0xd0] sm:$0xff]  ;;  %v155_v11 = vld [vmem:[#allocation2 + $0x18] sm:$0xff]  ;;  %v147_v14 = vld [vmem:[#allocation8 + $0xe8] sm:$0xff] }
  0x66   :  { %1025 = vmatpush1.bf16.msra.mxu1 %v1599_v61  ;;  %v154_v9 = vld [vmem:[#allocation2 + $0x10] sm:$0xff]  ;;  %v1678_v12 = vpack.c.bf16 %v144_v8, %v142_v3  ;;  %v149_v16 = vld [vmem:[#allocation8 + $0xf8] sm:$0xff]  ;;  %v146_v18 = vld [vmem:[#allocation8 + $0xe0] sm:$0xff] }
  0x67   :  { %997 = vmatpush3.bf16.msra.mxu0 %v994_v48  ;;  %1027 = vmatprep.subr.bf16.mxu1 %v1603_v1  ;;  %v1681_v21 = vpack.c.bf16 %v149_v16, %v147_v14  ;;  %v148_v23 = vld [vmem:[#allocation8 + $0xf0] sm:$0xff]  ;;  %v1694_v27 = vld [vmem:[%s1834_s4] sm:$0xff] }
  0x68   :  { %999 = vmatprep.subr.bf16.mxu0 %v998_v51  ;;  %v1684_v24 = vpack.c.bf16 %v148_v23, %v146_v18 }
  0x6a   :  { %1029 = vmatpush1.bf16.msra.mxu1 %v1606_v6 }
  0x6b   :  { %1001 = vmatpush3.bf16.msra.mxu0 %v998_v51  ;;  %1031 = vmatprep.subr.bf16.mxu1 %v1608_v7 }
  0x6c   :  { %1035 = vmatprep.subr.bf16.mxu0 %v1617_v13 }
  0x6e   :  { %965 = vmatmul.mubr.f32.vlgmr.msra.gmra.mrb[0].mxu0 %v153_v52  ;;  %1033 = vmatpush1.bf16.msra.mxu1 %v1612_v10  ;;  %v134_v52 = vld [vmem:[#allocation8 + $0x80] sm:$0xff] }
  0x6f   :  { %1067 = vmatprep.subr.bf16.mxu1 %v1567_v15  ;;  %1037 = vmatpush1.bf16.msra.mxu0 %v1619_v17  ;;  %v1667_v54 = vpack.c.bf16 %v136_v53, %v134_v52 }
  0x70   :  { %1039 = vmatprep.subr.bf16.mxu0 %v1622_v22  ;;  %967 = vmatprep.mubr.f32.mxu0 %v154_v9 }
  0x72   :  { %968 = vmatmul.mubr.f32.gmra.mrb[2].mxu0 %v155_v11 }
  0x73   :  { %1041 = vmatpush1.bf16.msra.mxu0 %v1626_v25  ;;  %404 = vmatprep.mubr.f32.mxu0 %v1458_v5 }
  0x74   :  { %1043 = vmatprep.subr.bf16.mxu0 %v1628_v30 }
  0x77   :  { %1045 = vmatpush1.bf16.msra.mxu0 %v1632_v33 }
  0x78   :  { %1047 = vmatprep.subr.bf16.mxu0 %v1634_v36 }
  0x7b   :  { %1049 = vmatpush1.bf16.msra.mxu0 %v1638_v41 }
  0x7c   :  { %1051 = vmatprep.subr.bf16.mxu0 %v1640_v44 }
  0x7f   :  { %1053 = vmatpush1.bf16.msra.mxu0 %v1667_v54 }
  0x80   :  { %1055 = vmatprep.subr.bf16.mxu0 %v1670_v59 }
  0x83   :  { %1057 = vmatpush1.bf16.msra.mxu0 %v1672_v63 }
  0x84   :  { %1059 = vmatprep.subr.bf16.mxu0 %v1676_v4 }
  0x87   :  { %1061 = vmatpush1.bf16.msra.mxu0 %v1678_v12 }
  0x88   :  { %1063 = vmatprep.subr.bf16.mxu0 %v1681_v21 }
  0x8b   :  { %1065 = vmatpush1.bf16.msra.mxu0 %v1684_v24 }
  0x8c   :  { %1099 = vmatprep.subr.bf16.mxu0 %v1617_v13 }
 0x141   :  { %v966_v48 = vpop.f32.mrb[0].mxu0 }
 0x142   :  { %v245_v49 = vpop.f32.mrb[1].mxu0  ;;  %v251_v26 = vadd.f32 %v966_v48, %v1647_v45 }
 0x143   :  { %v246_v50 = vadd.f32 %v1647_v45, %v245_v49 }
 0x145   :  { %1270 = vtanh.f32 %v246_v50  ;;  %v969_v42 = vpop.f32.mrb[2].mxu0  ;;  %v1735_v50 = vld [vmem:[%s1836_s6] ss:$0 sm:$0xff]  ;;  %s1459_s6 = smov [#allocation11]  }
 0x146   :  { %v255_v43 = vpop.f32.mrb[3].mxu0  ;;  %s882_s19 = sshll.u32 %s1459_s6, 4  ;;  %s883_s19 = int_to_ptr.vmem [resolvable:$true] %s882_s19 }
 0x147   :  { %v256_v48 = vadd.f32 %v1647_v45, %v255_v43  ;;  %s1374_s20 = scalar_lea.vmem %s883_s19, 128  ;;  %p1379_p5 = scmp.lt.s32.totalorder %s883_s19, %s883_s19 }
 0x148   :  { %p1375_p4 = scmp.ne.s32.totalorder %s883_s19, %s1374_s20  ;;  %p1380_p6 = scmp.lt.s32.totalorder %s1374_s20, %s1374_s20 }
 0x14a   :  { %p1381_p7 = por %p1380_p6, %p1379_p5 }
 0x14c   :  { %p1382_p8 = pnand %p1381_p7, %p1375_p4 }
 0x14f   :  { %v1271_v51 = vpop.eup %1270 }
 0x150   :  { %331 = vmatmul.mubr.f32.vlgmr.msra.gmra.mrb[0].mxu1 %v1271_v51 }
 0x151   :  { %1069 = vmatpush1.bf16.msra.mxu1 %v1569_v19  ;;  %485 = vmatprep.mubr.f32.mxu1 %v1458_v5 }
 0x152   :  { %1071 = vmatprep.subr.bf16.mxu1 %v1571_v20 }
 0x155   :  { %1073 = vmatpush1.bf16.msra.mxu1 %v1575_v28 }
 0x156   :  { %1075 = vmatprep.subr.bf16.mxu1 %v1578_v29 }
 0x159   :  { %1077 = vmatpush1.bf16.msra.mxu1 %v1581_v37 }
 0x15a   :  { %1079 = vmatprep.subr.bf16.mxu1 %v1584_v38 }
 0x15d   :  { %1081 = vmatpush1.bf16.msra.mxu1 %v1587_v46 }
 0x15e   :  { %1083 = vmatprep.subr.bf16.mxu1 %v1590_v47 }
 0x161   :  { %1085 = vmatpush1.bf16.msra.mxu1 %v1594_v55 }
 0x162   :  { %1087 = vmatprep.subr.bf16.mxu1 %v1597_v58 }
 0x165   :  { %1089 = vmatpush1.bf16.msra.mxu1 %v1599_v61 }
 0x166   :  { %1091 = vmatprep.subr.bf16.mxu1 %v1603_v1 }
 0x169   :  { %1093 = vmatpush1.bf16.msra.mxu1 %v1606_v6 }
 0x16a   :  { %1095 = vmatprep.subr.bf16.mxu1 %v1608_v7 }
 0x16d   :  { %1097 = vmatpush1.bf16.msra.mxu1 %v1612_v10 }
 0x16e   :  { %1131 = vmatprep.subr.bf16.mxu1 %v1567_v15 }
 0x223   :  { %v332_v31 = vpop.f32.mrb[0].mxu1 }
 0x224   :  { %v419_v32 = vadd.f32 %v332_v31, %v251_v26  ;;  %v334_v34 = vpop.f32.mrb[1].mxu1 }
 0x225   :  { %v338_v35 = vadd.f32 %v334_v34, %v1694_v27 }
 0x226   :  { %1272 = vtanh.f32 %v419_v32 }
 0x227   :  { %1274 = vtanh.f32 %v338_v35 }
 0x230   :  { %v1273_v39 = vpop.eup %1272 }
 0x231   :  { %v1275_v40 = vpop.eup %1274  ;;  %486 = vmatmul.mubr.f32.vlgmr.msra.gmra.mrb[2].mxu1 %v1273_v39 }
 0x232   :  { %405 = vmatmul.mubr.f32.vlgmr.msra.gmra.mrb[4].mxu0 %v1275_v40  ;;  %1133 = vmatpush1.bf16.msra.mxu1 %v1569_v19 }
 0x233   :  { %1101 = vmatpush1.bf16.msra.mxu0 %v1619_v17  ;;  %1135 = vmatprep.subr.bf16.mxu1 %v1571_v20 }
 0x234   :  { %1103 = vmatprep.subr.bf16.mxu0 %v1622_v22  ;;  %634 = vmatprep.mubr.f32.mxu1 %v1458_v5 }
 0x235   :  { %559 = vmatprep.mubr.f32.mxu0 %v1458_v5 }
 0x236   :  { %1137 = vmatpush1.bf16.msra.mxu1 %v1575_v28 }
 0x237   :  { %1105 = vmatpush1.bf16.msra.mxu0 %v1626_v25  ;;  %1139 = vmatprep.subr.bf16.mxu1 %v1578_v29 }
 0x238   :  { %1107 = vmatprep.subr.bf16.mxu0 %v1628_v30 }
 0x23a   :  { %1141 = vmatpush1.bf16.msra.mxu1 %v1581_v37 }
 0x23b   :  { %1109 = vmatpush1.bf16.msra.mxu0 %v1632_v33  ;;  %1143 = vmatprep.subr.bf16.mxu1 %v1584_v38 }
 0x23c   :  { %1111 = vmatprep.subr.bf16.mxu0 %v1634_v36 }
 0x23e   :  { %1145 = vmatpush1.bf16.msra.mxu1 %v1587_v46 }
 0x23f   :  { %1113 = vmatpush1.bf16.msra.mxu0 %v1638_v41  ;;  %1147 = vmatprep.subr.bf16.mxu1 %v1590_v47 }
 0x240   :  { %1115 = vmatprep.subr.bf16.mxu0 %v1640_v44 }
 0x242   :  { %1149 = vmatpush1.bf16.msra.mxu1 %v1594_v55 }
 0x243   :  { %1117 = vmatpush1.bf16.msra.mxu0 %v1667_v54  ;;  %1151 = vmatprep.subr.bf16.mxu1 %v1597_v58 }
 0x244   :  { %1119 = vmatprep.subr.bf16.mxu0 %v1670_v59 }
 0x246   :  { %1153 = vmatpush1.bf16.msra.mxu1 %v1599_v61 }
 0x247   :  { %1121 = vmatpush1.bf16.msra.mxu0 %v1672_v63  ;;  %1155 = vmatprep.subr.bf16.mxu1 %v1603_v1 }
 0x248   :  { %1123 = vmatprep.subr.bf16.mxu0 %v1676_v4 }
 0x24a   :  { %1157 = vmatpush1.bf16.msra.mxu1 %v1606_v6 }
 0x24b   :  { %1125 = vmatpush1.bf16.msra.mxu0 %v1678_v12  ;;  %1159 = vmatprep.subr.bf16.mxu1 %v1608_v7 }
 0x24c   :  { %1127 = vmatprep.subr.bf16.mxu0 %v1681_v21 }
 0x24e   :  { %1161 = vmatpush1.bf16.msra.mxu1 %v1612_v10 }
 0x24f   :  { %1129 = vmatpush1.bf16.msra.mxu0 %v1684_v24  ;;  %1195 = vmatprep.subr.bf16.mxu1 %v1567_v15 }
 0x250   :  { %1163 = vmatprep.subr.bf16.mxu0 %v1617_v13 }
 0x304   :  { %v487_v49 = vpop.f32.mrb[2].mxu1 }
 0x305   :  { %v568_v51 = vadd.f32 %v487_v49, %v256_v48  ;;  %v406_v52 = vpop.f32.mrb[4].mxu0  ;;  %v489_v53 = vpop.f32.mrb[3].mxu1 }
 0x306   :  { %v492_v56 = vadd.f32 %v489_v53, %v406_v52  ;;  %v408_v57 = vpop.f32.mrb[5].mxu0 }
 0x307   :  { %1276 = vtanh.f32 %v568_v51  ;;  %v417_v15 = vadd.f32 %v1735_v50, %v408_v57 }
 0x308   :  { %v493_v60 = vadd.f32 %v492_v56, %v1694_v27 }
 0x309   :  { %418 = vst [vmem:[#allocation10 - $0x5] sm:$0x20] %v417_v15 }
 0x30a   :  { %1278 = vtanh.f32 %v493_v60 }
 0x311   :  { %v1277_v62 = vpop.eup %1276 }
 0x312   :  { %635 = vmatmul.mubr.f32.vlgmr.msra.gmra.mrb[4].mxu1 %v1277_v62 }
 0x313   :  { %1197 = vmatpush1.bf16.msra.mxu1 %v1569_v19  ;;  %783 = vmatprep.mubr.f32.mxu1 %v1458_v5  ;;  %v261_v19 = vadd.f32 %v969_v42, %v1647_v45 }
 0x314   :  { %v1279_v0 = vpop.eup %1278  ;;  %1199 = vmatprep.subr.bf16.mxu1 %v1571_v20 }
 0x315   :  { %560 = vmatmul.mubr.f32.vlgmr.msra.gmra.mrb[6].mxu0 %v1279_v0 }
 0x316   :  { %1165 = vmatpush1.bf16.msra.mxu0 %v1619_v17  ;;  %708 = vmatprep.mubr.f32.mxu0 %v1458_v5 }
 0x317   :  { %1201 = vmatpush1.bf16.msra.mxu1 %v1575_v28  ;;  %1167 = vmatprep.subr.bf16.mxu0 %v1622_v22 }
 0x318   :  { %1203 = vmatprep.subr.bf16.mxu1 %v1578_v29 }
 0x31a   :  { %1169 = vmatpush1.bf16.msra.mxu0 %v1626_v25 }
 0x31b   :  { %1205 = vmatpush1.bf16.msra.mxu1 %v1581_v37  ;;  %1171 = vmatprep.subr.bf16.mxu0 %v1628_v30 }
 0x31c   :  { %1207 = vmatprep.subr.bf16.mxu1 %v1584_v38 }
 0x31e   :  { %1173 = vmatpush1.bf16.msra.mxu0 %v1632_v33 }
 0x31f   :  { %1209 = vmatpush1.bf16.msra.mxu1 %v1587_v46  ;;  %1175 = vmatprep.subr.bf16.mxu0 %v1634_v36 }
 0x320   :  { %1211 = vmatprep.subr.bf16.mxu1 %v1590_v47 }
 0x322   :  { %1177 = vmatpush1.bf16.msra.mxu0 %v1638_v41 }
 0x323   :  { %1213 = vmatpush1.bf16.msra.mxu1 %v1594_v55  ;;  %1179 = vmatprep.subr.bf16.mxu0 %v1640_v44 }
 0x324   :  { %1215 = vmatprep.subr.bf16.mxu1 %v1597_v58 }
 0x326   :  { %1181 = vmatpush1.bf16.msra.mxu0 %v1667_v54 }
 0x327   :  { %1217 = vmatpush1.bf16.msra.mxu1 %v1599_v61  ;;  %1183 = vmatprep.subr.bf16.mxu0 %v1670_v59 }
 0x328   :  { %1219 = vmatprep.subr.bf16.mxu1 %v1603_v1 }
 0x32a   :  { %1185 = vmatpush1.bf16.msra.mxu0 %v1672_v63 }
 0x32b   :  { %1221 = vmatpush1.bf16.msra.mxu1 %v1606_v6  ;;  %1187 = vmatprep.subr.bf16.mxu0 %v1676_v4 }
 0x32c   :  { %1223 = vmatprep.subr.bf16.mxu1 %v1608_v7 }
 0x32e   :  { %1189 = vmatpush1.bf16.msra.mxu0 %v1678_v12 }
 0x32f   :  { %1225 = vmatpush1.bf16.msra.mxu1 %v1612_v10  ;;  %1191 = vmatprep.subr.bf16.mxu0 %v1681_v21 }
 0x332   :  { %1193 = vmatpush1.bf16.msra.mxu0 %v1684_v24 }
 0x333   :  { %1227 = vmatprep.subr.bf16.mxu0 %v1617_v13 }
 0x3e5   :  { %v636_v20 = vpop.f32.mrb[4].mxu1 }
 0x3e6   :  { %v717_v28 = vadd.f32 %v636_v20, %v261_v19  ;;  %v638_v29 = vpop.f32.mrb[5].mxu1 }
 0x3e8   :  { %1280 = vtanh.f32 %v717_v28  ;;  %v561_v37 = vpop.f32.mrb[6].mxu0 }
 0x3e9   :  { %v641_v38 = vadd.f32 %v638_v29, %v561_v37  ;;  %v563_v46 = vpop.f32.mrb[7].mxu0 }
 0x3ea   :  { %v566_v47 = vadd.f32 %v1735_v50, %v563_v46 }
 0x3eb   :  { %v642_v55 = vadd.f32 %v641_v38, %v1694_v27 }
 0x3ec   :  { %567 = vst [vmem:[#allocation10 - $0x4] sm:$0x20] %v566_v47 }
 0x3ed   :  { %1282 = vtanh.f32 %v642_v55 }
 0x3f2   :  { %v1281_v58 = vpop.eup %1280 }
 0x3f3   :  { %864 = vst [vmem:[#allocation11] sm:$0xff] %v1281_v58  ;;  %784 = vmatmul.mubr.f32.vlgmr.msra.gmra.mrb[6].mxu1 %v1281_v58 }
 0x3f7   :  { %v1283_v61 = vpop.eup %1282 }
 0x3f8   :  { %709 = vmatmul.mubr.f32.vlgmr.msra.gmra.mrb[8].mxu0 %v1283_v61 }
 0x3f9   :  { %1229 = vmatpush1.bf16.msra.mxu0 %v1619_v17  ;;  %856 = vmatprep.mubr.f32.mxu0 %v1458_v5 }
 0x3fa   :  { %1231 = vmatprep.subr.bf16.mxu0 %v1622_v22 }
 0x3fd   :  { %1233 = vmatpush1.bf16.msra.mxu0 %v1626_v25 }
 0x3fe   :  { %1235 = vmatprep.subr.bf16.mxu0 %v1628_v30 }
 0x401   :  { %1237 = vmatpush1.bf16.msra.mxu0 %v1632_v33 }
 0x402   :  { %1239 = vmatprep.subr.bf16.mxu0 %v1634_v36 }
 0x405   :  { %1241 = vmatpush1.bf16.msra.mxu0 %v1638_v41 }
 0x406   :  { %1243 = vmatprep.subr.bf16.mxu0 %v1640_v44 }
 0x409   :  { %1245 = vmatpush1.bf16.msra.mxu0 %v1667_v54 }
 0x40a   :  { %1247 = vmatprep.subr.bf16.mxu0 %v1670_v59 }
 0x40d   :  { %1249 = vmatpush1.bf16.msra.mxu0 %v1672_v63 }
 0x40e   :  { %1251 = vmatprep.subr.bf16.mxu0 %v1676_v4 }
 0x411   :  { %1253 = vmatpush1.bf16.msra.mxu0 %v1678_v12 }
 0x412   :  { %1255 = vmatprep.subr.bf16.mxu0 %v1681_v21 }
 0x415   :  { %1257 = vmatpush1.bf16.msra.mxu0 %v1684_v24 }
 0x4c6   :  { %v785_v1 = vpop.f32.mrb[6].mxu1 }
 0x4c7   :  { %v786_v5 = vpop.f32.mrb[7].mxu1 }
 0x4cb   :  { %v710_v6 = vpop.f32.mrb[8].mxu0 }
 0x4cc   :  { %v789_v7 = vadd.f32 %v786_v5, %v710_v6  ;;  %v712_v10 = vpop.f32.mrb[9].mxu0 }
 0x4cd   :  { %v715_v13 = vadd.f32 %v1735_v50, %v712_v10 }
 0x4ce   :  { %v790_v17 = vadd.f32 %v789_v7, %v1694_v27 }
 0x4cf   :  { %716 = vst [vmem:[#allocation10 - $0x3] sm:$0x20] %v715_v13 }
 0x4d0   :  { %1284 = vtanh.f32 %v790_v17 }
 0x4da   :  { %v1285_v22 = vpop.eup %1284 }
 0x4db   :  { %865 = vst [vmem:[#allocation13] sm:$0xff] %v1285_v22  ;;  %857 = vmatmul.mubr.f32.vlgmr.msra.gmra.mrb[10].mxu0 %v1285_v22 }
 0x4dc   :  { %1385 = shalt.err (!%p1382_p8)
}
 0x4dd   :  { %s1386_s25 = scalar_lea.hbm %s1838_s8, 128 }
 0x4de   :  { %p1387_p9 = scmp.ne.s32.totalorder %s1838_s8, %s1386_s25  ;;  %p1390_p10 = scmp.lt.u32.totalorder %s1386_s25, %s1838_s8 }
 0x4e0   :  { %p1392_p11 = pnand %p1390_p10, %p1387_p9 }
 0x4e2   :  { %1395 = shalt.err (!%p1392_p11)
}
 0x4e3   :  { %885 = dma.vmem_to_hbm [thread:$0]  %s883_s19, 128, %s1838_s8, [#allocation12]  }
 0x4e4   :  { %s1460_s28 = smov [#allocation13]  }
 0x4e5   :  { %s892_s29 = sshll.u32 %s1460_s28, 4  ;;  %s893_s29 = int_to_ptr.vmem [resolvable:$true] %s892_s29 }
 0x4e6   :  { %s1396_s30 = scalar_lea.vmem %s893_s29, 128  ;;  %p1401_p13 = scmp.lt.s32.totalorder %s893_s29, %s893_s29 }
 0x4e7   :  { %p1397_p12 = scmp.ne.s32.totalorder %s893_s29, %s1396_s30  ;;  %p1402_p0 = scmp.lt.s32.totalorder %s1396_s30, %s1396_s30 }
 0x4e9   :  { %p1403_p1 = por %p1402_p0, %p1401_p13 }
 0x4eb   :  { %p1404_p2 = pnand %p1403_p1, %p1397_p12 }
 0x4ed   :  { %1407 = shalt.err (!%p1404_p2)
}
 0x4ee   :  { %s1408_s1 = scalar_lea.hbm %s1839_s9, 128 }
 0x4ef   :  { %p1409_p3 = scmp.ne.s32.totalorder %s1839_s9, %s1408_s1  ;;  %p1412_p4 = scmp.lt.u32.totalorder %s1408_s1, %s1839_s9 }
 0x4f1   :  { %p1414_p5 = pnand %p1412_p4, %p1409_p3 }
 0x4f3   :  { %1417 = shalt.err (!%p1414_p5)
}
 0x4f4   :  { %895 = dma.vmem_to_hbm [thread:$0]  %s893_s29, 128, %s1839_s9, [#allocation12]  }
 0x4f5   :  { %s1461_s16 = smov [#allocation10]  }
 0x4f6   :  { %s872_s2 = sshll.u32 %s1461_s16, 4  ;;  %s873_s2 = int_to_ptr.vmem [resolvable:$true] %s872_s2 }
 0x4f7   :  { %s1418_s17 = scalar_lea.vmem %s873_s2, 64  ;;  %p1423_p7 = scmp.lt.s32.totalorder %s873_s2, %s873_s2 }
 0x4f8   :  { %p1419_p6 = scmp.ne.s32.totalorder %s873_s2, %s1418_s17  ;;  %p1424_p8 = scmp.lt.s32.totalorder %s1418_s17, %s1418_s17 }
 0x4fa   :  { %p1425_p9 = por %p1424_p8, %p1423_p7 }
 0x4fc   :  { %p1426_p10 = pnand %p1425_p9, %p1419_p6 }
 0x5ae   :  { %v858_v25 = vpop.f32.mrb[10].mxu0 }
 0x5af   :  { %v859_v30 = vpop.f32.mrb[11].mxu0 }
 0x5b0   :  { %v862_v33 = vadd.f32 %v1735_v50, %v859_v30 }
 0x5b2   :  { %863 = vst [vmem:[#allocation10 - $0x2] sm:$0x20] %v862_v33 }
 0x5b3   :  { %1429 = shalt.err (!%p1426_p10)
}
 0x5b4   :  { %s1430_s6 = scalar_lea.hbm %s1837_s7, 64 }
 0x5b5   :  { %p1431_p11 = scmp.ne.s32.totalorder %s1837_s7, %s1430_s6  ;;  %p1434_p12 = scmp.lt.u32.totalorder %s1430_s6, %s1837_s7 }
 0x5b7   :  { %p1436_p13 = pnand %p1434_p12, %p1431_p11 }
 0x5b9   :  { %1439 = shalt.err (!%p1436_p13)
}
 0x5ba   :  { %875 = dma.vmem_to_hbm [thread:$0]  %s873_s2, 64, %s1837_s7, [#allocation4]  }
 0x5bb   :  { %1446 = dma.done.wait [#allocation4], 64  }
 0x5bc   :  { %1447 = vsyncadd [#allocation4], 4294967232 }
 0x5bd   :  { %1448 = dma.done.wait [#allocation12], 256  }
 0x5be   :  { %1449 = vsyncadd [#allocation12], 4294967040 }
 0x5bf   :  { %905 = vsyncpa [#allocation3], 1 }
 0x5c0   :  { %906 = vsyncpa [#allocation6], 1 }
 0x5c1   :  { %907 = vsyncpa [#allocation9], 1 }
 0x5c2   :  { %908 = vsyncpa [#allocation4], 1 }
 0x5c3   :  { %909 = vsyncpa [#allocation12], 1 }

</bundles_post_ra>
